<compile_context>
chip_gen: v5e
topology: v5e:2x2
jax: 0.10.0
libtpu: 0.0.40
codegen_flags: <defaults>
</compile_context>

<pallas_src>
import jax
import jax.numpy as jnp
import numpy as np
from jax import lax
from jax.experimental import pallas as pl
from jax.experimental.pallas import tpu as pltpu


def get_padding(kernel_size, dilation=1):
    return int((kernel_size * dilation - dilation) / 2)


def _leaky(v):
    # leaky_relu(v, 0.2) == max(v, 0.2*v)
    return jnp.maximum(v, 0.2 * v)


def _pick_tile(lout, target=512):
    """Lane tile for the output length: full length if small, else a multiple of 128."""
    if lout <= target:
        return lout, 1                       # single tile, full (exempt from 128 rule)
    tile = target                            # multiple of 128
    return tile, (lout + tile - 1) // tile


# ---------------------------------------------------------------------------
# Pallas kernel #1: one fused MDC stage (L-tiled)
#   y   = sum_i leaky_relu(conv1d(x; w_i, b_i, dilation=d_i, pad=p_i, stride=1), 0.2)
#   out = leaky_relu(conv1d(y; pw, pb, k=3, stride=s, pad=get_padding(k_last, d_last)), 0.2)
# ---------------------------------------------------------------------------
def mdc_stage_pallas(x, branch_ws, branch_bs, dilations, post_w, post_b, post_stride,
                     out_dtype=jnp.bfloat16, tile_target=512):
    B, Cin, L = x.shape
    Cout, _, Kp = post_w.shape
    Ks = [int(w.shape[2]) for w in branch_ws]
    dils = [int(d) for d in dilations]
    n = len(branch_ws)

    pads = [get_padding(k, d) for k, d in zip(Ks, dils)]
    louts = [L + 2 * p - d * (k - 1) for p, d, k in zip(pads, dils, Ks)]
    assert all(lo == louts[0] for lo in louts), "MDC branch output lengths must match"
    Ly = louts[0]
    max_pad = max(pads)

    # PyTorch MDC quirk: post conv has kernel 3 but padding = get_padding(last_k, last_d).
    pp = get_padding(Ks[-1], dils[-1])
    s = int(post_stride)
    Lp = (Ly + 2 * pp - Kp) // s + 1

    # ---- L tiling (over output positions) ----
    TILE, n_tiles = _pick_tile(Lp, tile_target)
    Ty = (TILE - 1) * s + Kp                 # padded-y columns needed per output tile
    XT = Ty + 2 * max_pad + 1                # x-window columns needed per output tile
    PL = pp + max_pad                        # host-side left zero pad of x
    PR = max(0, (n_tiles - 1) * TILE * s + XT - (L + PL))
    x_pad = jnp.pad(x, ((0, 0), (0, 0), (PL, PR)))   # one host-side pad per stage
    Lxp = L + PL + PR

    # ---- host-side weight packing: taps folded into the contraction dim, bf16 ----
    w_cat = jnp.concatenate(
        [jnp.transpose(w, (0, 2, 1)).reshape(Cout, k * Cin)
         for w, k in zip(branch_ws, Ks)], axis=1).astype(jnp.bfloat16)       # (Cout, Ctot)
    b_cat = jnp.stack([bb.reshape(Cout, 1).astype(jnp.float32)
                       for bb in branch_bs], axis=0)                         # (n, Cout, 1)
    pw_flat = jnp.transpose(post_w, (0, 2, 1)).reshape(
        Cout, Kp * Cout).astype(jnp.bfloat16)                                # (Cout, Kp*Cout)
    pb_col = post_b.reshape(Cout, 1).astype(jnp.float32)

    Ctot = int(sum(k * Cin for k in Ks))
    col_offs = np.cumsum([0] + [k * Cin for k in Ks]).tolist()

    def kernel(x_ref, w_ref, b_ref, pw_ref, pb_ref, o_ref, *scratch):
        t = pl.program_id(1)
        if n_tiles == 1:
            u0 = 0                                           # static slice, single tile
        else:
            u0 = pl.multiple_of(t * (TILE * s), 128)         # TILE is a multiple of 128 here

        # x halo window for this tile, cast to bf16 ONCE (slabs built directly in bf16).
        xw = x_ref[:, pl.ds(u0, XT)].astype(jnp.bfloat16)    # (Cin, XT)

        # ---- multi-dilation branches: one folded-tap MXU dot per branch ----
        y = None
        for bi in range(n):
            k, d, p = Ks[bi], dils[bi], pads[bi]
            base = max_pad - p
            slab = jnp.concatenate(
                [xw[:, base + tau * d: base + tau * d + Ty] for tau in range(k)],
                axis=0)                                      # (k*Cin, Ty) bf16
            w_bi = w_ref[:, col_offs[bi]:col_offs[bi + 1]]   # (Cout, k*Cin) bf16
            br = jnp.dot(w_bi, slab, preferred_element_type=jnp.float32)
            act = _leaky(br + b_ref[bi])                     # bias / act in f32
            y = act if y is None else y + act                # (Cout, Ty) f32

        # Zero the padded-y border columns (post-conv zero padding + edge-tile overshoot).
        col = lax.broadcasted_iota(jnp.int32, (Cout, Ty), 1)
        j = col + (u0 - pp)                                  # global y index of each column
        y = jnp.where((j >= 0) & (j < Ly), y, 0.0)

        # ---- fused post conv (kernel Kp, stride s) ----
        if s == 1:
            yb = y.astype(jnp.bfloat16)
            pslab = jnp.concatenate(
                [yb[:, tau: tau + TILE] for tau in range(Kp)], axis=0)        # (Kp*Cout, TILE)
            z = jnp.dot(pw_ref[...], pslab, preferred_element_type=jnp.float32)
        else:
            ysc, = scratch                                   # (Ty, Cout) f32 per-tile scratch
            ysc[...] = y.T                                   # fully overwritten: no zero fill
            taps = [ysc[pl.ds(tau, TILE, stride=s), :] for tau in range(Kp)]  # sublane-strided
            pslab = jnp.concatenate(taps, axis=1).astype(jnp.bfloat16)        # (TILE, Kp*Cout)
            z = jnp.einsum('ck,lk->cl', pw_ref[...], pslab,
                           preferred_element_type=jnp.float32)                # (Cout, TILE)

        o_ref[...] = _leaky(z + pb_ref[...]).astype(o_ref.dtype)

    scratch_shapes = [] if s == 1 else [pltpu.VMEM((Ty, Cout), jnp.float32)]

    return pl.pallas_call(
        kernel,
        grid=(B, n_tiles),
        in_specs=[
            # x block depends only on b -> fetched once per batch, resident across L tiles.
            pl.BlockSpec((None, Cin, Lxp), lambda b, t: (b, 0, 0)),
            pl.BlockSpec((Cout, Ctot), lambda b, t: (0, 0)),
            pl.BlockSpec((n, Cout, 1), lambda b, t: (0, 0, 0)),
            pl.BlockSpec((Cout, Kp * Cout), lambda b, t: (0, 0)),
            pl.BlockSpec((Cout, 1), lambda b, t: (0, 0)),
        ],
        out_specs=pl.BlockSpec((None, Cout, TILE), lambda b, t: (b, 0, t)),
        out_shape=jax.ShapeDtypeStruct((B, Cout, Lp), out_dtype),
        scratch_shapes=scratch_shapes,
        compiler_params=pltpu.CompilerParams(
            # Both axes independent -> both parallel (v7x 2-TC sharding; free on v5e/v6e).
            dimension_semantics=("parallel", "parallel"),
            # Tiny at test shapes; raise (and re-derive TILE) per chip for production L.
            vmem_limit_bytes=32 * 1024 * 1024),
    )(x_pad, w_cat, b_cat, pw_flat, pb_col)


# ---------------------------------------------------------------------------
# Pallas kernel #2: SBDBlock.post_conv  (Conv1d C->1, kernel 3, stride 1, pad 1), L-tiled
# ---------------------------------------------------------------------------
def final_conv_pallas(x, w, b, tile_target=512):
    B, Cin, L = x.shape
    Cout, _, K = w.shape
    pad = K // 2
    Lout = L + 2 * pad - (K - 1)

    TILE, n_tiles = _pick_tile(Lout, tile_target)
    XT = TILE + K - 1
    PL = pad
    PR = max(0, (n_tiles - 1) * TILE + XT - (L + PL))
    x_pad = jnp.pad(x, ((0, 0), (0, 0), (PL, PR)))
    Lxp = L + PL + PR

    w_flat = jnp.transpose(w, (0, 2, 1)).reshape(Cout, K * Cin).astype(jnp.bfloat16)
    b_col = b.reshape(Cout, 1).astype(jnp.float32)

    def kernel(x_ref, w_ref, b_ref, o_ref):
        t = pl.program_id(1)
        u0 = 0 if n_tiles == 1 else pl.multiple_of(t * TILE, 128)
        xw = x_ref[:, pl.ds(u0, XT)].astype(jnp.bfloat16)    # no-op cast when x is bf16
        slab = jnp.concatenate([xw[:, tau: tau + TILE] for tau in range(K)], axis=0)
        z = jnp.dot(w_ref[...], slab, preferred_element_type=jnp.float32)
        o_ref[...] = z + b_ref[...]                          # no activation

    return pl.pallas_call(
        kernel,
        grid=(B, n_tiles),
        in_specs=[
            pl.BlockSpec((None, Cin, Lxp), lambda bb, t: (bb, 0, 0)),
            pl.BlockSpec((Cout, K * Cin), lambda bb, t: (0, 0)),
            pl.BlockSpec((Cout, 1), lambda bb, t: (0, 0)),
        ],
        out_specs=pl.BlockSpec((None, Cout, TILE), lambda bb, t: (bb, 0, t)),
        out_shape=jax.ShapeDtypeStruct((B, Cout, Lout), jnp.float32),
        compiler_params=pltpu.CompilerParams(
            dimension_semantics=("parallel", "parallel"),
            vmem_limit_bytes=32 * 1024 * 1024),
    )(x_pad, w_flat, b_col)


# ---------------------------------------------------------------------------
# SBDBlock forward using the Pallas kernels
# ---------------------------------------------------------------------------
def sbd_block_forward(x, params, cfg):
    fmap = []
    for i, (stride, _ks, ds) in enumerate(zip(cfg["strides"], cfg["kernel_size"], cfg["dilations"])):
        p = params["mdc"][i]
        x = mdc_stage_pallas(x, p["branch_w"], p["branch_b"], ds,
                             p["post_w"], p["post_b"], stride,
                             out_dtype=jnp.bfloat16)
        fmap.append(x)
    out = final_conv_pallas(x, params["post_w"], params["post_b"])
    return out, fmap


# ---------------------------------------------------------------------------
# Pure-JAX reference (for correctness check; kept at full f32 precision)
# ---------------------------------------------------------------------------
def _conv1d_ref(x, w, b, stride, padding, dilation):
    out = jax.lax.conv_general_dilated(
        x, w, window_strides=(stride,), padding=[(padding, padding)],
        rhs_dilation=(dilation,), dimension_numbers=("NCH", "OIH", "NCH"),
        precision=jax.lax.Precision.HIGHEST)
    return out + b[None, :, None]


def sbd_block_ref(x, params, cfg):
    fmap = []
    for i, (stride, ks, ds) in enumerate(zip(cfg["strides"], cfg["kernel_size"], cfg["dilations"])):
        p = params["mdc"][i]
        acc = None
        for j, (k, d) in enumerate(zip(ks, ds)):
            y = _leaky(_conv1d_ref(x, p["branch_w"][j], p["branch_b"][j], 1, get_padding(k, d), d))
            acc = y if acc is None else acc + y
        x = _leaky(_conv1d_ref(acc, p["post_w"], p["post_b"], stride, get_padding(ks[-1], ds[-1]), 1))
        fmap.append(x)
    out = _conv1d_ref(x, params["post_w"], params["post_b"], 1, 3 // 2, 1)
    return out, fmap


# ---------------------------------------------------------------------------
# Deterministic parameter construction (synthetic init, no checkpoint).
# weight_norm / spectral_norm only reparameterize weights, so raw weights are used.
# ---------------------------------------------------------------------------
def init_params(key, cfg):
    segment_dim = cfg["segment_dim"]
    filters = cfg["filters"]
    filters_in_out = [(segment_dim, filters[0])]
    for i in range(len(filters) - 1):
        filters_in_out.append((filters[i], filters[i + 1]))

    params = {"mdc": []}
    for (cin, cout), ks in zip(filters_in_out, cfg["kernel_size"]):
        stage = {"branch_w": [], "branch_b": []}
        for k in ks:
            key, k1, k2 = jax.random.split(key, 3)
            stage["branch_w"].append(0.1 * jax.random.normal(k1, (cout, cin, k), jnp.float32))
            stage["branch_b"].append(0.1 * jax.random.normal(k2, (cout,), jnp.float32))
        key, k1, k2 = jax.random.split(key, 3)
        stage["post_w"] = 0.1 * jax.random.normal(k1, (cout, cout, 3), jnp.float32)
        stage["post_b"] = 0.1 * jax.random.normal(k2, (cout,), jnp.float32)
        params["mdc"].append(stage)

    key, k1, k2 = jax.random.split(key, 3)
    params["post_w"] = 0.1 * jax.random.normal(k1, (1, filters[-1], 3), jnp.float32)
    params["post_b"] = 0.1 * jax.random.normal(k2, (1,), jnp.float32)
    return params


if __name__ == "__main__":
    # Small synthetic configuration consistent with SBDBlock.__init__
    cfg = {
        "segment_dim": 8,
        "filters": [8, 16],
        "strides": [1, 2],
        "kernel_size": [[3, 5], [3, 5]],
        "dilations": [[1, 2], [1, 2]],
    }
    B, L = 2, 32

    key = jax.random.PRNGKey(0)
    key, kx = jax.random.split(key)
    x = jax.random.normal(kx, (B, cfg["segment_dim"], L), jnp.float32)
    params = init_params(key, cfg)

    out, fmap = sbd_block_forward(x, params, cfg)
    out = jax.block_until_ready(out)
    fmap = [jax.block_until_ready(f) for f in fmap]

    out_ref, fmap_ref = sbd_block_ref(x, params, cfg)
    # Tolerance accounts for bf16 MXU inputs AND bf16 inter-stage storage (f32 accumulation).
    np.testing.assert_allclose(np.asarray(out, dtype=np.float32),
                               np.asarray(out_ref, dtype=np.float32), rtol=3e-2, atol=3e-2)
    for f, fr in zip(fmap, fmap_ref):
        np.testing.assert_allclose(np.asarray(f, dtype=np.float32),
                                   np.asarray(fr, dtype=np.float32), rtol=3e-2, atol=3e-2)

    print("KERNEL_OK")
</pallas_src>

<mosaic_0001>
module attributes {stable_mosaic.version = 11 : i64} {
  func.func @kernel(%arg0: i32, %arg1: i32, %arg2: memref<1x8x49xf32, #tpu.memory_space<vmem>>, %arg3: memref<8x64xbf16, #tpu.memory_space<vmem>>, %arg4: memref<2x8x1xf32, #tpu.memory_space<vmem>>, %arg5: memref<8x24xbf16, #tpu.memory_space<vmem>>, %arg6: memref<8x1xf32, #tpu.memory_space<vmem>>, %arg7: memref<1x8x38xbf16, #tpu.memory_space<vmem>>) attributes {dimension_semantics = [#tpu.dimension_semantics<parallel>, #tpu.dimension_semantics<parallel>], iteration_bounds = array<i64: 2, 1>, scalar_prefetch = 0 : i64, scratch_operands = 0 : i64, tpu.core_type = #tpu.core_type<tc>, window_params = [{transform_indices = @transform_0, window_bounds = array<i64: 1, 8, 49>}, {pipeline_mode = #tpu.pipeline_mode<synchronous>, transform_indices = @transform_1, window_bounds = array<i64: 8, 64>}, {pipeline_mode = #tpu.pipeline_mode<synchronous>, transform_indices = @transform_2, window_bounds = array<i64: 2, 8, 1>}, {pipeline_mode = #tpu.pipeline_mode<synchronous>, transform_indices = @transform_3, window_bounds = array<i64: 8, 24>}, {pipeline_mode = #tpu.pipeline_mode<synchronous>, transform_indices = @transform_4, window_bounds = array<i64: 8, 1>}, {transform_indices = @transform_5, window_bounds = array<i64: 1, 8, 38>}]} {
    %c0 = arith.constant 0 : index
    %c0_0 = arith.constant 0 : index
    %c0_1 = arith.constant 0 : index
    %0 = vector.load %arg2[%c0, %c0_0, %c0_1] : memref<1x8x49xf32, #tpu.memory_space<vmem>>, vector<1x8x49xf32>
    %1 = vector.shape_cast %0 : vector<1x8x49xf32> to vector<8x49xf32>
    %2 = arith.truncf %1 : vector<8x49xf32> to vector<8x49xbf16>
    %3 = vector.extract_strided_slice %2 {offsets = [0, 3], sizes = [8, 40], strides = [1, 1]} : vector<8x49xbf16> to vector<8x40xbf16>
    %4 = vector.extract_strided_slice %2 {offsets = [0, 4], sizes = [8, 40], strides = [1, 1]} : vector<8x49xbf16> to vector<8x40xbf16>
    %5 = vector.extract_strided_slice %2 {offsets = [0, 5], sizes = [8, 40], strides = [1, 1]} : vector<8x49xbf16> to vector<8x40xbf16>
    %6 = tpu.concatenate %3, %4, %5 in 0 : vector<8x40xbf16>, vector<8x40xbf16>, vector<8x40xbf16> -> vector<24x40xbf16>
    %c0_2 = arith.constant 0 : index
    %c0_3 = arith.constant 0 : index
    %7 = vector.load %arg3[%c0_2, %c0_3] : memref<8x64xbf16, #tpu.memory_space<vmem>>, vector<8x24xbf16>
    %cst = arith.constant dense<0.000000e+00> : vector<8x40xf32>
    %8 = tpu.matmul %7, %6, %cst {dimension_numbers = #tpu.dot_dimension_numbers<[1], [0], [0], [1], [0, 0, 1, 1], [], []>} : vector<8x24xbf16>, vector<24x40xbf16>, vector<8x40xf32> -> vector<8x40xf32>
    %c0_4 = arith.constant 0 : index
    %c0_5 = arith.constant 0 : index
    %c0_6 = arith.constant 0 : index
    %9 = vector.load %arg4[%c0_4, %c0_5, %c0_6] : memref<2x8x1xf32, #tpu.memory_space<vmem>>, vector<1x8x1xf32>
    %10 = vector.shape_cast %9 : vector<1x8x1xf32> to vector<8x1xf32>
    %11 = vector.broadcast %10 : vector<8x1xf32> to vector<8x40xf32>
    %12 = arith.addf %8, %11 : vector<8x40xf32>
    %cst_7 = arith.constant 2.000000e-01 : f32
    %13 = vector.broadcast %cst_7 : f32 to vector<8x40xf32>
    %14 = arith.mulf %13, %12 : vector<8x40xf32>
    %15 = arith.maximumf %12, %14 : vector<8x40xf32>
    %16 = vector.extract_strided_slice %2 {offsets = [0, 0], sizes = [8, 40], strides = [1, 1]} : vector<8x49xbf16> to vector<8x40xbf16>
    %17 = vector.extract_strided_slice %2 {offsets = [0, 2], sizes = [8, 40], strides = [1, 1]} : vector<8x49xbf16> to vector<8x40xbf16>
    %18 = vector.extract_strided_slice %2 {offsets = [0, 4], sizes = [8, 40], strides = [1, 1]} : vector<8x49xbf16> to vector<8x40xbf16>
    %19 = vector.extract_strided_slice %2 {offsets = [0, 6], sizes = [8, 40], strides = [1, 1]} : vector<8x49xbf16> to vector<8x40xbf16>
    %20 = vector.extract_strided_slice %2 {offsets = [0, 8], sizes = [8, 40], strides = [1, 1]} : vector<8x49xbf16> to vector<8x40xbf16>
    %21 = tpu.concatenate %16, %17, %18, %19, %20 in 0 : vector<8x40xbf16>, vector<8x40xbf16>, vector<8x40xbf16>, vector<8x40xbf16>, vector<8x40xbf16> -> vector<40x40xbf16>
    %c0_8 = arith.constant 0 : index
    %c24 = arith.constant 24 : index
    %22 = vector.load %arg3[%c0_8, %c24] : memref<8x64xbf16, #tpu.memory_space<vmem>>, vector<8x40xbf16>
    %cst_9 = arith.constant dense<0.000000e+00> : vector<8x40xf32>
    %23 = tpu.matmul %22, %21, %cst_9 {dimension_numbers = #tpu.dot_dimension_numbers<[1], [0], [0], [1], [0, 0, 1, 1], [], []>} : vector<8x40xbf16>, vector<40x40xbf16>, vector<8x40xf32> -> vector<8x40xf32>
    %c1 = arith.constant 1 : index
    %c0_10 = arith.constant 0 : index
    %c0_11 = arith.constant 0 : index
    %24 = vector.load %arg4[%c1, %c0_10, %c0_11] : memref<2x8x1xf32, #tpu.memory_space<vmem>>, vector<1x8x1xf32>
    %25 = vector.shape_cast %24 : vector<1x8x1xf32> to vector<8x1xf32>
    %26 = vector.broadcast %25 : vector<8x1xf32> to vector<8x40xf32>
    %27 = arith.addf %23, %26 : vector<8x40xf32>
    %cst_12 = arith.constant 2.000000e-01 : f32
    %28 = vector.broadcast %cst_12 : f32 to vector<8x40xf32>
    %29 = arith.mulf %28, %27 : vector<8x40xf32>
    %30 = arith.maximumf %27, %29 : vector<8x40xf32>
    %31 = arith.addf %15, %30 : vector<8x40xf32>
    %32 = tpu.iota {dimensions = array<i32: 1>} : vector<8x40xi32>
    %c-4_i32 = arith.constant -4 : i32
    %33 = vector.broadcast %c-4_i32 : i32 to vector<8x40xi32>
    %34 = arith.addi %32, %33 : vector<8x40xi32>
    %c0_i32 = arith.constant 0 : i32
    %35 = vector.broadcast %c0_i32 : i32 to vector<8x40xi32>
    %36 = arith.cmpi sge, %34, %35 : vector<8x40xi32>
    %c32_i32 = arith.constant 32 : i32
    %37 = vector.broadcast %c32_i32 : i32 to vector<8x40xi32>
    %38 = arith.cmpi slt, %34, %37 : vector<8x40xi32>
    %39 = arith.andi %36, %38 : vector<8x40xi1>
    %cst_13 = arith.constant 0.000000e+00 : f32
    %40 = vector.broadcast %cst_13 : f32 to vector<8x40xf32>
    %41 = arith.select %39, %31, %40 : vector<8x40xi1>, vector<8x40xf32>
    %42 = arith.truncf %41 : vector<8x40xf32> to vector<8x40xbf16>
    %43 = vector.extract_strided_slice %42 {offsets = [0, 0], sizes = [8, 38], strides = [1, 1]} : vector<8x40xbf16> to vector<8x38xbf16>
    %44 = vector.extract_strided_slice %42 {offsets = [0, 1], sizes = [8, 38], strides = [1, 1]} : vector<8x40xbf16> to vector<8x38xbf16>
    %45 = vector.extract_strided_slice %42 {offsets = [0, 2], sizes = [8, 38], strides = [1, 1]} : vector<8x40xbf16> to vector<8x38xbf16>
    %46 = tpu.concatenate %43, %44, %45 in 0 : vector<8x38xbf16>, vector<8x38xbf16>, vector<8x38xbf16> -> vector<24x38xbf16>
    %c0_14 = arith.constant 0 : index
    %c0_15 = arith.constant 0 : index
    %47 = vector.load %arg5[%c0_14, %c0_15] : memref<8x24xbf16, #tpu.memory_space<vmem>>, vector<8x24xbf16>
    %cst_16 = arith.constant dense<0.000000e+00> : vector<8x38xf32>
    %48 = tpu.matmul %47, %46, %cst_16 {dimension_numbers = #tpu.dot_dimension_numbers<[1], [0], [0], [1], [0, 0, 1, 1], [], []>} : vector<8x24xbf16>, vector<24x38xbf16>, vector<8x38xf32> -> vector<8x38xf32>
    %c0_17 = arith.constant 0 : index
    %c0_18 = arith.constant 0 : index
    %49 = vector.load %arg6[%c0_17, %c0_18] : memref<8x1xf32, #tpu.memory_space<vmem>>, vector<8x1xf32>
    %50 = vector.broadcast %49 : vector<8x1xf32> to vector<8x38xf32>
    %51 = arith.addf %48, %50 : vector<8x38xf32>
    %cst_19 = arith.constant 2.000000e-01 : f32
    %52 = vector.broadcast %cst_19 : f32 to vector<8x38xf32>
    %53 = arith.mulf %52, %51 : vector<8x38xf32>
    %54 = arith.maximumf %51, %53 : vector<8x38xf32>
    %55 = arith.truncf %54 : vector<8x38xf32> to vector<8x38xbf16>
    %c0_20 = arith.constant 0 : index
    %c0_21 = arith.constant 0 : index
    %c0_22 = arith.constant 0 : index
    %56 = vector.load %arg7[%c0_20, %c0_21, %c0_22] : memref<1x8x38xbf16, #tpu.memory_space<vmem>>, vector<1x8x38xbf16>
    %57 = vector.shape_cast %56 : vector<1x8x38xbf16> to vector<8x38xbf16>
    %58 = vector.shape_cast %55 : vector<8x38xbf16> to vector<1x8x38xbf16>
    tpu.vector_store %arg7[%c0_20, %c0_21, %c0_22], %58 {strides = array<i32>} : memref<1x8x38xbf16, #tpu.memory_space<vmem>>, vector<1x8x38xbf16>,
    return
  }
  func.func @transform_0(%arg0: i32, %arg1: i32) -> (i32, i32, i32) {
    %c0_i32 = arith.constant 0 : i32
    %c0_i32_0 = arith.constant 0 : i32
    %c0_i32_1 = arith.constant 0 : i32
    return %arg0, %c0_i32, %c0_i32_0 : i32, i32, i32
  }
  func.func @transform_1(%arg0: i32, %arg1: i32) -> (i32, i32) {
    %c0_i32 = arith.constant 0 : i32
    %c0_i32_0 = arith.constant 0 : i32
    %c0_i32_1 = arith.constant 0 : i32
    return %c0_i32, %c0_i32_0 : i32, i32
  }
  func.func @transform_2(%arg0: i32, %arg1: i32) -> (i32, i32, i32) {
    %c0_i32 = arith.constant 0 : i32
    %c0_i32_0 = arith.constant 0 : i32
    %c0_i32_1 = arith.constant 0 : i32
    %c0_i32_2 = arith.constant 0 : i32
    return %c0_i32, %c0_i32_0, %c0_i32_1 : i32, i32, i32
  }
  func.func @transform_3(%arg0: i32, %arg1: i32) -> (i32, i32) {
    %c0_i32 = arith.constant 0 : i32
    %c0_i32_0 = arith.constant 0 : i32
    %c0_i32_1 = arith.constant 0 : i32
    return %c0_i32, %c0_i32_0 : i32, i32
  }
  func.func @transform_4(%arg0: i32, %arg1: i32) -> (i32, i32) {
    %c0_i32 = arith.constant 0 : i32
    %c0_i32_0 = arith.constant 0 : i32
    %c0_i32_1 = arith.constant 0 : i32
    return %c0_i32, %c0_i32_0 : i32, i32
  }
  func.func @transform_5(%arg0: i32, %arg1: i32) -> (i32, i32, i32) {
    %c0_i32 = arith.constant 0 : i32
    %c0_i32_0 = arith.constant 0 : i32
    return %arg0, %c0_i32, %arg1 : i32, i32, i32
  }
}

</mosaic_0001>

<bundles_post_ra>
// kernel: tpu_custom_call.1
= control target key start
LH: loop header
LB: loop body
LE: loop exit
PB: predicated region body
PF: predicated region fallthrough
CT: control target
= control target key end

     0   :  { %10 = vsyncpa [#allocation3], 0  ;;  %s790_s0 = inlined_call_operand.vmem [shape: f32[2,8,49], index: 0, kind: input, shape index: {}]   ;;  %s791_s1 = inlined_call_operand.vmem [shape: bf16[8,64], index: 1, kind: input, shape index: {}]   ;;  %s792_s2 = inlined_call_operand.vmem [shape: f32[2,8,1], index: 2, kind: input, shape index: {}]   ;;  %s793_s3 = inlined_call_operand.vmem [shape: bf16[8,24], index: 3, kind: input, shape index: {}]   ;;  %s794_s4 = inlined_call_operand.vmem [shape: f32[8,1], index: 4, kind: input, shape index: {}]   ;;  %s795_s5 = inlined_call_operand.hbm [shape: bf16[2,8,38], index: 5, kind: output, shape index: {}]  }
   0x1   :  { %12 = vsyncpa [#allocation3 + $0x1], 0  ;;  %s665_s18 = smov 0   ;;  %s667_s19 = smov 0  }
   0x2   :  { %s669_s20 = smov 0   ;;  %s671_s21 = smov 0  }
   0x3   :  { %s673_s22 = smov 0   ;;  %s675_s23 = smov 0  }
   0x4 LB: > { %s466_s24 = sadd.s32 4294967295, %s625_s23   ;;  %s467_s25 = sadd.s32 4294967294, %s625_s23   ;;  %s625_s23 = sphi %s675_s23, %s18_s23   ;;  %s621_s22 = sphi %s673_s22, %s802_s22   ;;  %s617_s21 = sphi %s671_s21, %s801_s21   ;;  %s613_s20 = sphi %s669_s20, %s800_s20   ;;  %s609_s19 = sphi %s667_s19, %s799_s19   ;;  %s605_s18 = sphi %s665_s18, %s798_s18  }
   0x5   : > { %s30_s26 = sadd.s32 1, %s621_s22  ;;  %s149_s27 = sadd.s32 1, %s613_s20 }
   0x6   : > { %p32_p0 = scmp.ge.s32.totalorder %s30_s26, 2  ;;  %p159_p1 = scmp.ne.s32.totalorder %s613_s20, %s609_s19 }
   0x7   : > { %p160_p2 = scmp.eq.s32.totalorder %s466_s24, 1  ;;  %p165_p3 = scmp.ne.s32.totalorder %s609_s19, %s605_s18 }
   0x8   : > { %s804_s26 = smov (%p32_p0, %s30_s26), 0  ;;  %p166_p5 = scmp.eq.s32.totalorder %s467_s25, 1 }
   0x9   : > { %p705_p4 = por %p160_p2, %p159_p1  ;;  %s144_s29 = ssub.s32 %s621_s22, %s804_s26 }
   0xa   : > { %p470_p6 = scmp.ge.s32.totalorder %s625_s23, 1  ;;  %p147_p7 = scmp.eq.s32.totalorder %s144_s29, 0 }
   0xb   : > { %p712_p8 = por %p166_p5, %p165_p3  ;;  %p203_p9 = scmp.lt.s32.totalorder %s625_s23, 3 }
   0xc   : > { %s718_s6 = scalar_select %p147_p7, %s613_s20, %s149_s27  }
   0xd   : > { %p204_p10 = pnand %p470_p6, %p203_p9 }
   0xe   : > { %p230_p11 = scmp.lt.s32.totalorder (!%p204_p10), %s617_s21, 1  ;;  %s627_s12 = smov (!%p204_p10), 120  }
   0xf   : > { %207 = sbr.rel (%p204_p10) target bundleno = 680 (0x2a8), region = 40  ;;  %s628_s13 = smov (!%p204_p10), 126  }
  0x10   : > { %s629_s14 = smov (!%p204_p10), 124   ;;  %s630_s15 = smov (!%p204_p10), 127  }
  0x11   : > { %s631_s16 = smov (!%p204_p10), 122   ;;  %s632_s25 = smov (!%p204_p10), 125  }
  0x12   : > { %s633_s27 = smov (!%p204_p10), 104  }
  0x14   : > { %s231_s7 = scalar_select %p230_p11, %s617_s21, 1  ;;  %vm244_vm0 = vcmask 1043456   ;;  %v248_v5 = vld [vmem:[%s791_s1] sm:$0xf]  ;;  %v474_v16 = vld [vmem:[%s792_s2 + $0x8] sm:$0xff]  ;;  %v634_v18 = vmov 0   ;;  %v331_v23 = vlaneseq }
  0x15   : > { %v304_v10 = vunpack.c.l.b16 %v248_v5  ;;  %v249_v17 = vld [vmem:[%s792_s2] sm:$0xff]  ;;  %545 = vset.pattern.permute.xlu0 %v634_v18  ;;  %544 = vset.pattern.permute.xlu2 %v634_v18  ;;  %vm308_vm1 = vcmask 326656   ;;  %vm261_vm2 = vcmask 195584   ;;  %vm379_vm6 = vcmask 306176  }
  0x16   : > { %s472_s8 = sshll.u32 %s231_s7, 3  ;;  %546 = vset.pattern.permute.xlu1 %v634_v18  ;;  %v332_v25 = vand.u32 127, %v331_v23  ;;  %v351_v43 = vld [vmem:[%s794_s4] sm:$0xff] }
  0x17   : > { %s233_s11 = scalar_lea.vmem %s790_s0, %s472_s8  ;;  %v305_v12 = vpack.c.b16 %v304_v10, %v304_v10  ;;  %v350_v48 = vld [vmem:[%s793_s3] sm:$0xf] }
  0x18   : > { %v235_v0 = vld [vmem:[%s233_s11] sm:$0xff]  ;;  %v333_v29 = vadd.s32 4294967292, %v332_v25 }
  0x19   : > { %v236_v1 = vpack.c.bf16 %v235_v0, %v235_v0 }
  0x1a   : > { %vm334_vm3 = vcmp.ge.s32.totalorder %v333_v29, 0  ;;  %vm335_vm4 = vcmp.lt.s32.totalorder %v333_v29, 32 }
  0x1b   : > { %v238_v2 = vunpack.c.l.b16 %v236_v1  ;;  %vm336_vm5 = vmand %vm334_vm3, %vm335_vm4 }
  0x1d   : > { %v239_v3 = vpack.c.b16 %v238_v2, %v238_v2 }
  0x1f   : > { %287 = vrot.lane.b32.xlu1 %v239_v3, %s627_s12  ;;  %242 = vrot.lane.b32.xlu0 %v239_v3, %s628_s13  ;;  %s567_s12 = scalar_lea.hbm %s795_s5, 8 }
  0x20   : > { %283 = vrot.lane.b32.xlu2 %v239_v3, %s629_s14 }
  0x27   : > { %240 = vrot.lane.b32.xlu0 %v239_v3, %s630_s15 }
  0x28   : > { %285 = vrot.lane.b32.xlu2 %v239_v3, %s631_s16  ;;  %s478_s16 = sshll.u32 %s617_s21, 2 }
  0x30   : > { %252 = vperm.xlu2 %544, %v249_v17  }
  0x7a   : > { %v284_v4 = vpop.permute.xlu2 %283 }
  0x82   : > { %v286_v6 = vpop.permute.xlu2 %285 }
  0x83   : > { %v294_v11 = vsel %vm244_vm0, %v284_v4, %v286_v6 }
  0x8a   : > { %v253_v28 = vpop.permute.xlu2 %252 }
  0x91   : > { %v288_v7 = vpop.permute.xlu1 %287  ;;  %v243_v8 = vpop.permute.xlu0 %242 }
  0x92   : > { %258 = vrot.lane.b32.xlu1 %v243_v8, %s632_s25  ;;  %v313_v9 = vsel %vm244_vm0, %v288_v7, 0  ;;  %v290_v14 = vsel %vm244_vm0, %v236_v1, %v243_v8 }
  0x93   : > { %320 = vmatpush.bf16.msra.mxu1 %v313_v9 }
  0x97   : > { %321 = vmatpush.bf16.msra.mxu1 %v294_v11 }
  0x99   : > { %v241_v13 = vpop.permute.xlu0 %240 }
  0x9a   : > { %306 = vrot.lane.b32.xlu1 %v305_v12, %s633_s27  ;;  %v247_v15 = vsel %vm244_vm0, %v236_v1, %v241_v13 }
  0x9b   : > { %322 = vmatpush.bf16.msra.mxu1 %v290_v14  ;;  %256 = vrot.lane.b32.xlu0 %v247_v15, %s632_s25  ;;  %s393_s25 = scalar_lea.hbm %s795_s5, %s478_s16 }
  0x9c   : > { %s397_s7 = sshll.u32 %s393_s25, 4  ;;  %s398_s7 = int_to_ptr.hbm [resolvable:$true] %s397_s7 }
  0x9d   : > { %s561_s21 = sshra.s32 %s398_s7, 4  ;;  %s562_s21 = int_to_ptr.hbm [resolvable:$true] %s561_s21 }
  0x9e   : > { %s563_s9 = scalar_lea.hbm %s562_s21, 4  ;;  %p568_p1 = scmp.lt.s32.totalorder %s562_s21, %s795_s5 }
  0x9f   : > { %p564_p12 = scmp.ne.s32.totalorder %s562_s21, %s563_s9  ;;  %p569_p2 = scmp.lt.s32.totalorder %s567_s12, %s563_s9 }
  0xa1   : > { %p565_p13 = pnand %p564_p12, %p705_p4  ;;  %p570_p3 = por %p569_p2, %p568_p1 }
  0xa3   : > { %300 = vperm.xlu0 %545, %v474_v16   ;;  %p566_p0 = pneg %p565_p13 }
  0xa5   : > { %p571_p5 = pnand %p570_p3, %p566_p0 }
 0x104   : > { %v259_v19 = vpop.permute.xlu1 %258 }
 0x105   : > { %v266_v20 = vsel %vm244_vm0, %v259_v19, 0 }
 0x106   : > { %274 = vmatpush.bf16.msra.mxu0 %v266_v20 }
 0x10c   : > { %v307_v21 = vpop.permute.xlu1 %306 }
 0x10d   : > { %475 = vmatmul.msk.bf16.vlgmr.msra.gmra.mxu1 %vm308_vm1, %v307_v21  ;;  %v257_v22 = vpop.permute.xlu0 %256 }
 0x10e   : > { %275 = vmatpush.bf16.msra.mxu0 %v257_v22 }
 0x111   : > { %473 = vmatmul.msk.bf16.vlgmr.msra.gmra.mxu0 %vm261_vm2, %v248_v5 }
 0x115   : > { %v301_v24 = vpop.permute.xlu0 %300 }
 0x18a   : > { %v324_v26 = vpop.f32.mrf.mxu1 }
 0x18b   : > { %v325_v27 = vadd.f32 %v324_v26, %v301_v24 }
 0x18d   : > { %v328_v31 = vmul.f32 0.2, %v325_v27 }
 0x18e   : > { %v277_v30 = vpop.f32.mrf.mxu0 }
 0x18f   : > { %v278_v32 = vadd.f32 %v277_v30, %v253_v28  ;;  %v329_v35 = vmax.f32 %v325_v27, %v328_v31 }
 0x191   : > { %v281_v33 = vmul.f32 0.2, %v278_v32 }
 0x192   : > { %v326_v34 = vpop.f32.mrf.mxu1 }
 0x193   : > { %v282_v36 = vmax.f32 %v278_v32, %v281_v33 }
 0x195   : > { %v330_v37 = vadd.f32 %v329_v35, %v282_v36 }
 0x196   : > { %v279_v38 = vpop.f32.mrf.mxu0 }
 0x197   : > { %v337_v39 = vsel %vm336_vm5, %v330_v37, 0.0 }
 0x198   : > { %v338_v40 = vpack.c.bf16 %v337_v39, %v337_v39 }
 0x19a   : > { %v340_v41 = vunpack.c.l.b16 %v338_v40 }
 0x19c   : > { %v341_v42 = vpack.c.b16 %v340_v41, %v340_v41 }
 0x19e   : > { %342 = vrot.lane.b32.xlu2 %v341_v42, %s630_s15  ;;  %344 = vrot.lane.b32.xlu1 %v341_v42, %s628_s13  ;;  %s227_s13 = sand.u32 1, %s609_s19  }
 0x19f   : > { %s471_s15 = sshll.u32 %s227_s13, 2  ;;  %s382_s8 = scalar_lea.sflag [#allocation3], %s227_s13 }
 0x1a0   : > { %s229_s27 = scalar_lea.vmem [#allocation2], %s471_s15 }
 0x1a1   : > { %s395_s29 = sshll.u32 %s229_s27, 4  ;;  %s396_s29 = int_to_ptr.vmem [resolvable:$true] %s395_s29 }
 0x1a6   : > { %354 = vperm.xlu1 %546, %v351_v43  }
 0x1f8   : > { %v343_v46 = vpop.permute.xlu2 %342 }
 0x1f9   : > { %v348_v47 = vsel %vm244_vm0, %v338_v40, %v343_v46 }
 0x210   : > { %v345_v44 = vpop.permute.xlu1 %344 }
 0x211   : > { %v361_v45 = vsel %vm244_vm0, %v345_v44, 0 }
 0x212   : > { %369 = vmatpush.bf16.msra.mxu2 %v361_v45 }
 0x216   : > { %370 = vmatpush.bf16.msra.mxu2 %v348_v47 }
 0x218   : > { %v355_v49 = vpop.permute.xlu1 %354 }
 0x219   : > { %476 = vmatmul.msk.bf16.vlgmr.msra.gmra.mxu2 %vm261_vm2, %v350_v48 }
 0x29c   : > { %v372_v50 = vpop.f32.mrf.mxu2 }
 0x29d   : > { %v373_v51 = vadd.f32 %v372_v50, %v355_v49 }
 0x29f   : > { %v376_v52 = vmul.f32 0.2, %v373_v51 }
 0x2a1   : > { %v377_v53 = vmax.f32 %v373_v51, %v376_v52 }
 0x2a3   : > { %v378_v54 = vpack.c.bf16 %v377_v53, %v377_v53 }
 0x2a4   : > { %v374_v55 = vpop.f32.mrf.mxu2 }
 0x2a5   : > { %380 = vst.msk [vmem:[%s229_s27] sm:$0xf] %vm379_vm6, %v378_v54 }
 0x2a6   : > { %574 = shalt.err (!%p571_p5)
}
 0x2a7   : > { %481 = dma.vmem_to_hbm [thread:$0]  (%p705_p4), %s396_s29, 64, %s398_s7, %s382_s8  }
 0x2a8 PF: > { %p487_p6 = scmp.ge.s32.totalorder %s625_s23, 2  ;;  %s409_s13 = sand.u32 1, %s605_s18  }
 0x2a9   : > { %s410_s16 = scalar_lea.sflag [#allocation3], %s409_s13 }
 0x2aa   : > { %p484_p7 = pnand %p487_p6, %p712_p8 }
 0x2ac   : > { %p485_p9 = pneg %p484_p7 }
 0x2ae   : > { %600 = dma.done.wait (%p485_p9), %s410_s16, 64  }
 0x2af   : > { %602 = vsyncadd (%p485_p9), %s410_s16, 4294967232  ;;  %s18_s23 = sadd.s32 1, %s625_s23   ;;  %s798_s18 = smov %s609_s19 }
 0x2b0   : > { %p15_p10 = scmp.ge.s32.totalorder %s18_s23, 4   ;;  %s799_s19 = smov %s613_s20 }
 0x2b1   : > { %s800_s20 = smov %s718_s6  ;;  %s801_s21 = smov %s621_s22 }
 0x2b2   : > { %s802_s22 = smov %s804_s26  ;;  %17 = sbr.rel (!%p15_p10) target bundleno = 4 (0x4), region = 76 }
 0x2b7   :  { %416 = vsyncpa [#allocation3], 1 }
 0x2b8   :  { %418 = vsyncpa [#allocation3 + $0x1], 1 }

</bundles_post_ra>
